<compile_context>
chip_gen: v5e
topology: v5e:2x2
jax: 0.10.0
libtpu: 0.0.40
codegen_flags: <defaults>
</compile_context>

<pallas_src>
import math

import jax
import jax.numpy as jnp
from jax.experimental import pallas as pl
from jax.experimental.pallas import tpu as pltpu

_OUT_LANES = 128  # lane-dense output width (col 0=logp, 1=value, 2=entropy)


def _round_up(x, m):
    return ((x + m - 1) // m) * m


def _use_bf16_matmul():
    """bf16 matmul operands on v6e / v7x; keep f32 on v5e / unknown chips."""
    try:
        kind = jax.devices()[0].device_kind.lower()
        return ("v6" in kind) or ("v7" in kind)
    except Exception:
        return False


# ---------------------------------------------------------------------------
# Kernel
# ---------------------------------------------------------------------------
def _evaluate_kernel(x_ref, act_ref,
                     w1_ref, b1_ref, w2_ref, b2_ref, w3_ref, b3_ref,
                     out_ref):
    Bt = x_ref.shape[0]
    A = w3_ref.shape[1] - 1           # action_dim (last fused column is value)
    mm_dtype = w1_ref.dtype           # bf16 on v6e/v7x, f32 otherwise

    x = x_ref[...]                    # [Bt, S] (already in mm_dtype)

    # Fused 3-layer MLP for both heads (block-diagonal packed weights).
    h = jnp.tanh(
        jnp.dot(x, w1_ref[...], preferred_element_type=jnp.float32) + b1_ref[...]
    )                                                                  # [Bt, 2H]
    h = jnp.tanh(
        jnp.dot(h.astype(mm_dtype), w2_ref[...],
                preferred_element_type=jnp.float32) + b2_ref[...]
    )                                                                  # [Bt, 2H]
    y = (
        jnp.dot(h.astype(mm_dtype), w3_ref[...],
                preferred_element_type=jnp.float32) + b3_ref[...]
    )                                                                  # [Bt, A+1]

    logits = y[:, :A]                 # [Bt, A]
    value = y[:, A:A + 1]             # [Bt, 1]

    # Softmax / log-softmax statistics (f32).
    m = jnp.max(logits, axis=-1, keepdims=True)
    shifted = logits - m
    e = jnp.exp(shifted)
    denom = jnp.sum(e, axis=-1, keepdims=True)
    log_denom = jnp.log(denom)
    inv_denom = pl.reciprocal(denom, approx=True)    # EUP slot, ~free

    # Categorical.log_prob(action) = selected shifted logit - log-sum-exp.
    lane = jax.lax.broadcasted_iota(jnp.int32, (Bt, A), 1)
    sel = jnp.where(lane == act_ref[...], shifted, 0.0)
    logp = jnp.sum(sel, axis=-1, keepdims=True) - log_denom            # [Bt, 1]

    # Categorical.entropy() = log_denom - sum(softmax * shifted); no probs tensor.
    ent = log_denom - jnp.sum(e * shifted, axis=-1, keepdims=True) * inv_denom

    # Lane-dense packed output: one unmasked [Bt, 128] store.
    col = jax.lax.broadcasted_iota(jnp.int32, (Bt, _OUT_LANES), 1)
    out_ref[...] = jnp.where(
        col == 0, logp,
        jnp.where(col == 1, value,
                  jnp.where(col == 2, ent, 0.0)))


# ---------------------------------------------------------------------------
# Parameter construction / packing
# ---------------------------------------------------------------------------
def _linear_params(key, fan_in, fan_out):
    """PyTorch nn.Linear default init: U(-1/sqrt(fan_in), 1/sqrt(fan_in)).

    Returned weight is [fan_in, fan_out] (already transposed for x @ W)."""
    kw, kb = jax.random.split(key)
    bound = 1.0 / math.sqrt(fan_in)
    w = jax.random.uniform(kw, (fan_in, fan_out), jnp.float32, -bound, bound)
    b = jax.random.uniform(kb, (1, fan_out), jnp.float32, -bound, bound)
    return w, b


def make_actor_critic_params(key, state_dim, action_dim, n_latent_var):
    keys = jax.random.split(key, 6)
    w1a, b1a = _linear_params(keys[0], state_dim, n_latent_var)
    w2a, b2a = _linear_params(keys[1], n_latent_var, n_latent_var)
    w3a, b3a = _linear_params(keys[2], n_latent_var, action_dim)
    w1v, b1v = _linear_params(keys[3], state_dim, n_latent_var)
    w2v, b2v = _linear_params(keys[4], n_latent_var, n_latent_var)
    w3v, b3v = _linear_params(keys[5], n_latent_var, 1)
    return dict(
        w1a=w1a, b1a=b1a, w2a=w2a, b2a=b2a, w3a=w3a, b3a=b3a,
        w1v=w1v, b1v=b1v, w2v=w2v, b2v=b2v, w3v=w3v, b3v=b3v,
    )


def pack_actor_critic_params(params, matmul_dtype=jnp.float32):
    """Pack the two heads into block-diagonal fused weights (done once)."""
    H = params["w2a"].shape[0]
    A = params["w3a"].shape[1]

    w1 = jnp.concatenate([params["w1a"], params["w1v"]], axis=1)       # [S, 2H]
    b1 = jnp.concatenate([params["b1a"], params["b1v"]], axis=1)       # [1, 2H]

    w2 = jnp.zeros((2 * H, 2 * H), jnp.float32)
    w2 = w2.at[:H, :H].set(params["w2a"]).at[H:, H:].set(params["w2v"])
    b2 = jnp.concatenate([params["b2a"], params["b2v"]], axis=1)       # [1, 2H]

    w3 = jnp.zeros((2 * H, A + 1), jnp.float32)
    w3 = w3.at[:H, :A].set(params["w3a"]).at[H:, A:].set(params["w3v"])
    b3 = jnp.concatenate([params["b3a"], params["b3v"]], axis=1)       # [1, A+1]

    # Matmul operands in bf16 on v6e/v7x; biases stay f32 (added post-matmul).
    w1 = w1.astype(matmul_dtype)
    w2 = w2.astype(matmul_dtype)
    w3 = w3.astype(matmul_dtype)
    return dict(w1=w1, b1=b1, w2=w2, b2=b2, w3=w3, b3=b3)


# ---------------------------------------------------------------------------
# Wrapper
# ---------------------------------------------------------------------------
def actor_critic_evaluate(packed, state, action, *, block_b=512):
    """Pallas equivalent of ActorCritic.evaluate(state, action).

    Args:
      packed: dict from pack_actor_critic_params.
      state : [B, state_dim] float32
      action: [B] integer action indices
    Returns:
      (action_logprobs [B], state_value [B], dist_entropy [B]) float32
    """
    B, S = state.shape
    w1, b1 = packed["w1"], packed["b1"]
    w2, b2 = packed["w2"], packed["b2"]
    w3, b3 = packed["w3"], packed["b3"]
    H2 = w2.shape[0]
    A = w3.shape[1] - 1

    # Batch tiling: Bt rows per grid step (sublane-aligned), pad B up to it.
    Bt = max(8, min(block_b, _round_up(B, 8)))
    Bp = _round_up(B, Bt)

    x = state.astype(w1.dtype)
    act = action.astype(jnp.int32).reshape(B, 1)
    if Bp != B:
        x = jnp.pad(x, ((0, Bp - B), (0, 0)))
        act = jnp.pad(act, ((0, Bp - B), (0, 0)))

    w_bytes = sum(int(a.size) * a.dtype.itemsize
                  for a in (w1, b1, w2, b2, w3, b3))
    cost = pl.CostEstimate(
        flops=2 * Bp * (S * H2 + H2 * H2 + H2 * (A + 1)),
        transcendentals=Bp * (2 * H2 + A + 2),       # tanh, exp, log, recip
        bytes_accessed=(x.size * x.dtype.itemsize + act.size * 4
                        + w_bytes + Bp * _OUT_LANES * 4),
    )

    out = pl.pallas_call(
        _evaluate_kernel,
        out_shape=jax.ShapeDtypeStruct((Bp, _OUT_LANES), jnp.float32),
        grid_spec=pltpu.PrefetchScalarGridSpec(
            num_scalar_prefetch=0,
            grid=(Bp // Bt,),
            in_specs=[
                pl.BlockSpec((Bt, S), lambda i: (i, 0)),     # state tile
                pl.BlockSpec((Bt, 1), lambda i: (i, 0)),     # action indices
                pl.BlockSpec(w1.shape, lambda i: (0, 0)),    # weights stay resident
                pl.BlockSpec(b1.shape, lambda i: (0, 0)),
                pl.BlockSpec(w2.shape, lambda i: (0, 0)),
                pl.BlockSpec(b2.shape, lambda i: (0, 0)),
                pl.BlockSpec(w3.shape, lambda i: (0, 0)),
                pl.BlockSpec(b3.shape, lambda i: (0, 0)),
            ],
            out_specs=pl.BlockSpec((Bt, _OUT_LANES), lambda i: (i, 0)),
        ),
        compiler_params=pltpu.CompilerParams(
            dimension_semantics=("parallel",),   # megacore-shardable batch axis
        ),
        cost_estimate=cost,
    )(x, act, w1, b1, w2, b2, w3, b3)

    logp = out[:B, 0]
    val = out[:B, 1]
    ent = out[:B, 2]
    return logp, val, ent


# ---------------------------------------------------------------------------
# Pure-JAX reference (mirrors the PyTorch module) for validation
# ---------------------------------------------------------------------------
def _reference_evaluate(params, state, action):
    h = jnp.tanh(state @ params["w1a"] + params["b1a"])
    h = jnp.tanh(h @ params["w2a"] + params["b2a"])
    logits = h @ params["w3a"] + params["b3a"]
    log_probs = jax.nn.log_softmax(logits, axis=-1)
    probs = jnp.exp(log_probs)
    logp = jnp.take_along_axis(log_probs, action[:, None], axis=-1)[:, 0]
    ent = -jnp.sum(probs * log_probs, axis=-1)

    hv = jnp.tanh(state @ params["w1v"] + params["b1v"])
    hv = jnp.tanh(hv @ params["w2v"] + params["b2v"])
    val = (hv @ params["w3v"] + params["b3v"])[:, 0]
    return logp, val, ent


if __name__ == "__main__":
    # TODO(synk): Categorical.sample() in act() and checkpoint save()/load() are
    # host-side / not part of the evaluate() forward pass, so not kernelized.
    state_dim, action_dim, n_latent_var = 8, 4, 32
    batch = 8

    key = jax.random.PRNGKey(0)
    k_params, k_state, k_action = jax.random.split(key, 3)

    params = make_actor_critic_params(k_params, state_dim, action_dim, n_latent_var)

    use_bf16 = _use_bf16_matmul()
    matmul_dtype = jnp.bfloat16 if use_bf16 else jnp.float32
    packed = pack_actor_critic_params(params, matmul_dtype)

    state = jax.random.normal(k_state, (batch, state_dim), dtype=jnp.float32)
    action = jax.random.randint(k_action, (batch,), 0, action_dim, dtype=jnp.int32)

    logp, val, ent = actor_critic_evaluate(packed, state, action)
    jax.block_until_ready((logp, val, ent))

    # Sanity check against pure-JAX f32 reference. Looser tolerance when the
    # MXU operands are bf16 (v6e/v7x) or because of the approx EUP reciprocal.
    logp_r, val_r, ent_r = _reference_evaluate(params, state, action)
    atol = 1e-1 if use_bf16 else 1e-2
    assert jnp.allclose(logp, logp_r, atol=atol), "logprob mismatch"
    assert jnp.allclose(val, val_r, atol=atol), "value mismatch"
    assert jnp.allclose(ent, ent_r, atol=atol), "entropy mismatch"

    print("KERNEL_OK")
</pallas_src>

<mosaic_0001>
module attributes {stable_mosaic.version = 11 : i64} {
  func.func @_evaluate_kernel(%arg0: i32, %arg1: memref<8x8xf32, #tpu.memory_space<vmem>>, %arg2: memref<8x1xi32, #tpu.memory_space<vmem>>, %arg3: memref<8x64xf32, #tpu.memory_space<vmem>>, %arg4: memref<1x64xf32, #tpu.memory_space<vmem>>, %arg5: memref<64x64xf32, #tpu.memory_space<vmem>>, %arg6: memref<1x64xf32, #tpu.memory_space<vmem>>, %arg7: memref<64x5xf32, #tpu.memory_space<vmem>>, %arg8: memref<1x5xf32, #tpu.memory_space<vmem>>, %arg9: memref<8x128xf32, #tpu.memory_space<vmem>>) attributes {dimension_semantics = [#tpu.dimension_semantics<parallel>], iteration_bounds = array<i64: 1>, scalar_prefetch = 0 : i64, scratch_operands = 0 : i64, tpu.core_type = #tpu.core_type<tc>, window_params = [{transform_indices = @transform_0, window_bounds = array<i64: 8, 8>}, {transform_indices = @transform_1, window_bounds = array<i64: 8, 1>}, {pipeline_mode = #tpu.pipeline_mode<synchronous>, transform_indices = @transform_2, window_bounds = array<i64: 8, 64>}, {pipeline_mode = #tpu.pipeline_mode<synchronous>, transform_indices = @transform_3, window_bounds = array<i64: 1, 64>}, {pipeline_mode = #tpu.pipeline_mode<synchronous>, transform_indices = @transform_4, window_bounds = array<i64: 64, 64>}, {pipeline_mode = #tpu.pipeline_mode<synchronous>, transform_indices = @transform_5, window_bounds = array<i64: 1, 64>}, {pipeline_mode = #tpu.pipeline_mode<synchronous>, transform_indices = @transform_6, window_bounds = array<i64: 64, 5>}, {pipeline_mode = #tpu.pipeline_mode<synchronous>, transform_indices = @transform_7, window_bounds = array<i64: 1, 5>}, {transform_indices = @transform_8, window_bounds = array<i64: 8, 128>}]} {
    %c0 = arith.constant 0 : index
    %c0_0 = arith.constant 0 : index
    %0 = vector.load %arg1[%c0, %c0_0] : memref<8x8xf32, #tpu.memory_space<vmem>>, vector<8x8xf32>
    %c0_1 = arith.constant 0 : index
    %c0_2 = arith.constant 0 : index
    %1 = vector.load %arg3[%c0_1, %c0_2] : memref<8x64xf32, #tpu.memory_space<vmem>>, vector<8x64xf32>
    %cst = arith.constant dense<0.000000e+00> : vector<8x64xf32>
    %2 = tpu.matmul %0, %1, %cst {dimension_numbers = #tpu.dot_dimension_numbers<[1], [0], [0], [1], [0, 0, 1, 1], [], []>} : vector<8x8xf32>, vector<8x64xf32>, vector<8x64xf32> -> vector<8x64xf32>
    %c0_3 = arith.constant 0 : index
    %c0_4 = arith.constant 0 : index
    %3 = vector.load %arg4[%c0_3, %c0_4] : memref<1x64xf32, #tpu.memory_space<vmem>>, vector<1x64xf32>
    %4 = vector.broadcast %3 : vector<1x64xf32> to vector<8x64xf32>
    %5 = arith.addf %2, %4 : vector<8x64xf32>
    %6 = math.tanh %5 : vector<8x64xf32>
    %c0_5 = arith.constant 0 : index
    %c0_6 = arith.constant 0 : index
    %7 = vector.load %arg5[%c0_5, %c0_6] : memref<64x64xf32, #tpu.memory_space<vmem>>, vector<64x64xf32>
    %cst_7 = arith.constant dense<0.000000e+00> : vector<8x64xf32>
    %8 = tpu.matmul %6, %7, %cst_7 {dimension_numbers = #tpu.dot_dimension_numbers<[1], [0], [0], [1], [0, 0, 1, 1], [], []>} : vector<8x64xf32>, vector<64x64xf32>, vector<8x64xf32> -> vector<8x64xf32>
    %c0_8 = arith.constant 0 : index
    %c0_9 = arith.constant 0 : index
    %9 = vector.load %arg6[%c0_8, %c0_9] : memref<1x64xf32, #tpu.memory_space<vmem>>, vector<1x64xf32>
    %10 = vector.broadcast %9 : vector<1x64xf32> to vector<8x64xf32>
    %11 = arith.addf %8, %10 : vector<8x64xf32>
    %12 = math.tanh %11 : vector<8x64xf32>
    %c0_10 = arith.constant 0 : index
    %c0_11 = arith.constant 0 : index
    %13 = vector.load %arg7[%c0_10, %c0_11] : memref<64x5xf32, #tpu.memory_space<vmem>>, vector<64x5xf32>
    %cst_12 = arith.constant dense<0.000000e+00> : vector<8x5xf32>
    %14 = tpu.matmul %12, %13, %cst_12 {dimension_numbers = #tpu.dot_dimension_numbers<[1], [0], [0], [1], [0, 0, 1, 1], [], []>} : vector<8x64xf32>, vector<64x5xf32>, vector<8x5xf32> -> vector<8x5xf32>
    %c0_13 = arith.constant 0 : index
    %c0_14 = arith.constant 0 : index
    %15 = vector.load %arg8[%c0_13, %c0_14] : memref<1x5xf32, #tpu.memory_space<vmem>>, vector<1x5xf32>
    %16 = vector.broadcast %15 : vector<1x5xf32> to vector<8x5xf32>
    %17 = arith.addf %14, %16 : vector<8x5xf32>
    %18 = vector.extract_strided_slice %17 {offsets = [0, 0], sizes = [8, 4], strides = [1, 1]} : vector<8x5xf32> to vector<8x4xf32>
    %19 = vector.extract_strided_slice %17 {offsets = [0, 4], sizes = [8, 1], strides = [1, 1]} : vector<8x5xf32> to vector<8x1xf32>
    %cst_15 = arith.constant dense<0xFF800000> : vector<8xf32>
    %20 = vector.multi_reduction <maximumf>, %18, %cst_15 [1] : vector<8x4xf32> to vector<8xf32>
    %21 = vector.shape_cast %20 : vector<8xf32> to vector<8x1xf32>
    %22 = vector.broadcast %21 : vector<8x1xf32> to vector<8x4xf32>
    %23 = arith.subf %18, %22 : vector<8x4xf32>
    %24 = math.exp %23 : vector<8x4xf32>
    %cst_16 = arith.constant dense<0.000000e+00> : vector<8xf32>
    %25 = vector.multi_reduction <add>, %24, %cst_16 [1] : vector<8x4xf32> to vector<8xf32>
    %26 = vector.shape_cast %25 : vector<8xf32> to vector<8x1xf32>
    %27 = math.log %26 : vector<8x1xf32>
    %28 = tpu.reciprocal %26 {approx = true} : vector<8x1xf32> -> vector<8x1xf32>
    %29 = tpu.iota {dimensions = array<i32: 1>} : vector<8x4xi32>
    %c0_17 = arith.constant 0 : index
    %c0_18 = arith.constant 0 : index
    %30 = vector.load %arg2[%c0_17, %c0_18] : memref<8x1xi32, #tpu.memory_space<vmem>>, vector<8x1xi32>
    %31 = vector.broadcast %30 : vector<8x1xi32> to vector<8x4xi32>
    %32 = arith.cmpi eq, %29, %31 : vector<8x4xi32>
    %cst_19 = arith.constant 0.000000e+00 : f32
    %33 = vector.broadcast %cst_19 : f32 to vector<8x4xf32>
    %34 = arith.select %32, %23, %33 : vector<8x4xi1>, vector<8x4xf32>
    %cst_20 = arith.constant dense<0.000000e+00> : vector<8xf32>
    %35 = vector.multi_reduction <add>, %34, %cst_20 [1] : vector<8x4xf32> to vector<8xf32>
    %36 = vector.shape_cast %35 : vector<8xf32> to vector<8x1xf32>
    %37 = arith.subf %36, %27 : vector<8x1xf32>
    %38 = arith.mulf %24, %23 : vector<8x4xf32>
    %cst_21 = arith.constant dense<0.000000e+00> : vector<8xf32>
    %39 = vector.multi_reduction <add>, %38, %cst_21 [1] : vector<8x4xf32> to vector<8xf32>
    %40 = vector.shape_cast %39 : vector<8xf32> to vector<8x1xf32>
    %41 = arith.mulf %40, %28 : vector<8x1xf32>
    %42 = arith.subf %27, %41 : vector<8x1xf32>
    %43 = tpu.iota {dimensions = array<i32: 1>} : vector<8x128xi32>
    %c0_i32 = arith.constant 0 : i32
    %44 = vector.broadcast %c0_i32 : i32 to vector<8x128xi32>
    %45 = arith.cmpi eq, %43, %44 : vector<8x128xi32>
    %c1_i32 = arith.constant 1 : i32
    %46 = vector.broadcast %c1_i32 : i32 to vector<8x128xi32>
    %47 = arith.cmpi eq, %43, %46 : vector<8x128xi32>
    %c2_i32 = arith.constant 2 : i32
    %48 = vector.broadcast %c2_i32 : i32 to vector<8x128xi32>
    %49 = arith.cmpi eq, %43, %48 : vector<8x128xi32>
    %cst_22 = arith.constant 0.000000e+00 : f32
    %50 = vector.shape_cast %42 : vector<8x1xf32> to vector<8x1xf32>
    %51 = vector.broadcast %50 : vector<8x1xf32> to vector<8x128xf32>
    %52 = vector.broadcast %cst_22 : f32 to vector<8x128xf32>
    %53 = arith.select %49, %51, %52 : vector<8x128xi1>, vector<8x128xf32>
    %54 = vector.shape_cast %19 : vector<8x1xf32> to vector<8x1xf32>
    %55 = vector.broadcast %54 : vector<8x1xf32> to vector<8x128xf32>
    %56 = arith.select %47, %55, %53 : vector<8x128xi1>, vector<8x128xf32>
    %57 = vector.shape_cast %37 : vector<8x1xf32> to vector<8x1xf32>
    %58 = vector.broadcast %57 : vector<8x1xf32> to vector<8x128xf32>
    %59 = arith.select %45, %58, %56 : vector<8x128xi1>, vector<8x128xf32>
    %c0_23 = arith.constant 0 : index
    %c0_24 = arith.constant 0 : index
    %60 = vector.load %arg9[%c0_23, %c0_24] : memref<8x128xf32, #tpu.memory_space<vmem>>, vector<8x128xf32>
    tpu.vector_store %arg9[%c0_23, %c0_24], %59 {strides = array<i32>} : memref<8x128xf32, #tpu.memory_space<vmem>>, vector<8x128xf32>,
    return
  }
  func.func @transform_0(%arg0: i32) -> (i32, i32) {
    %c0_i32 = arith.constant 0 : i32
    %c0_i32_0 = arith.constant 0 : i32
    return %arg0, %c0_i32 : i32, i32
  }
  func.func @transform_1(%arg0: i32) -> (i32, i32) {
    %c0_i32 = arith.constant 0 : i32
    %c0_i32_0 = arith.constant 0 : i32
    return %arg0, %c0_i32 : i32, i32
  }
  func.func @transform_2(%arg0: i32) -> (i32, i32) {
    %c0_i32 = arith.constant 0 : i32
    %c0_i32_0 = arith.constant 0 : i32
    %c0_i32_1 = arith.constant 0 : i32
    return %c0_i32, %c0_i32_0 : i32, i32
  }
  func.func @transform_3(%arg0: i32) -> (i32, i32) {
    %c0_i32 = arith.constant 0 : i32
    %c0_i32_0 = arith.constant 0 : i32
    %c0_i32_1 = arith.constant 0 : i32
    return %c0_i32, %c0_i32_0 : i32, i32
  }
  func.func @transform_4(%arg0: i32) -> (i32, i32) {
    %c0_i32 = arith.constant 0 : i32
    %c0_i32_0 = arith.constant 0 : i32
    %c0_i32_1 = arith.constant 0 : i32
    return %c0_i32, %c0_i32_0 : i32, i32
  }
  func.func @transform_5(%arg0: i32) -> (i32, i32) {
    %c0_i32 = arith.constant 0 : i32
    %c0_i32_0 = arith.constant 0 : i32
    %c0_i32_1 = arith.constant 0 : i32
    return %c0_i32, %c0_i32_0 : i32, i32
  }
  func.func @transform_6(%arg0: i32) -> (i32, i32) {
    %c0_i32 = arith.constant 0 : i32
    %c0_i32_0 = arith.constant 0 : i32
    %c0_i32_1 = arith.constant 0 : i32
    return %c0_i32, %c0_i32_0 : i32, i32
  }
  func.func @transform_7(%arg0: i32) -> (i32, i32) {
    %c0_i32 = arith.constant 0 : i32
    %c0_i32_0 = arith.constant 0 : i32
    %c0_i32_1 = arith.constant 0 : i32
    return %c0_i32, %c0_i32_0 : i32, i32
  }
  func.func @transform_8(%arg0: i32) -> (i32, i32) {
    %c0_i32 = arith.constant 0 : i32
    %c0_i32_0 = arith.constant 0 : i32
    return %arg0, %c0_i32 : i32, i32
  }
}

</mosaic_0001>

<bundles_post_ra>
// kernel: tpu_custom_call.1
= control target key start
LH: loop header
LB: loop body
LE: loop exit
PB: predicated region body
PF: predicated region fallthrough
CT: control target
= control target key end

     0   :  { %13 = vsyncpa [#allocation3], 0  ;;  %s406_s0 = inlined_call_operand.vmem [shape: f32[8,8], index: 0, kind: input, shape index: {}]   ;;  %s407_s1 = inlined_call_operand.vmem [shape: s32[8,1], index: 1, kind: input, shape index: {}]   ;;  %s408_s2 = inlined_call_operand.hbm [shape: f32[8,64], index: 2, kind: input, shape index: {}]   ;;  %s409_s3 = inlined_call_operand.vmem [shape: f32[1,64], index: 3, kind: input, shape index: {}]   ;;  %s410_s4 = inlined_call_operand.vmem [shape: f32[64,64], index: 4, kind: input, shape index: {}]   ;;  %s411_s5 = inlined_call_operand.vmem [shape: f32[1,64], index: 5, kind: input, shape index: {}]   ;;  %s412_s6 = inlined_call_operand.vmem [shape: f32[64,5], index: 6, kind: input, shape index: {}]   ;;  %s413_s7 = inlined_call_operand.vmem [shape: f32[1,5], index: 7, kind: input, shape index: {}]   ;;  %s414_s8 = inlined_call_operand.hbm [shape: f32[8,128], index: 8, kind: output, shape index: {}]  }
   0x1   :  { %14 = vsyncpa [#allocation4], 0  ;;  %s24_s29 = sshll.u32 %s408_s2, 4  ;;  %s282_s30 = smov [#allocation2]   ;;  %s25_s29 = int_to_ptr.hbm [resolvable:$true] %s24_s29 }
   0x2   :  { %s26_s9 = sshll.u32 %s282_s30, 4  ;;  %s27_s9 = int_to_ptr.vmem [resolvable:$true] %s26_s9 }
   0x3   :  { %29 = dma.hbm_to_vmem [thread:$0]  %s25_s29, 128, %s27_s9, [#allocation3]  }
   0x4   :  { %278 = dma.done.wait [#allocation3], 128  }
   0x5   :  { %279 = vsyncadd [#allocation3], 4294967168  ;;  %vm50_vm0 = vcmask 64512   ;;  %v45_v0 = vld [vmem:[#allocation2] sm:$0xff]  ;;  %v82_v2 = vld [vmem:[%s410_s4 + $0x38] sm:$0xff]  ;;  %vm87_vm1 = vcmask 523264   ;;  %v160_v38 = vlaneseq }
   0x6   :  { %v44_v1 = vld [vmem:[%s406_s0] sm:$0xff]  ;;  %69 = vmatpush.msra.mxu0 %v45_v0  ;;  %99 = vmatpush.msra.mxu1 %v82_v2  ;;  %v81_v3 = vld [vmem:[%s410_s4 + $0x30] sm:$0xff]  ;;  %v80_v4 = vld [vmem:[%s410_s4 + $0x28] sm:$0xff]  ;;  %v283_v26 = vmov 0   ;;  %vm147_vm2 = vcmask 31744   ;;  %v284_v32 = vmov 4  }
   0x7   :  { %207 = vmatmul.msk.f32.vlgmr.msra.gmra.mxu0 %vm50_vm0, %v44_v1  ;;  %v79_v5 = vld [vmem:[%s410_s4 + $0x20] sm:$0xff]  ;;  %v78_v6 = vld [vmem:[%s410_s4 + $0x18] sm:$0xff]  ;;  %v77_v7 = vld [vmem:[%s410_s4 + $0x10] sm:$0xff]  ;;  %214 = vset.pattern.permute.xlu0 %v283_v26  ;;  %v161_v39 = vand.u32 127, %v160_v38  ;;  %s197_s24 = sshll.u32 %s414_s8, 4  ;;  %s198_s24 = int_to_ptr.hbm [resolvable:$true] %s197_s24 }
   0x8   :  { %100 = vmatpush.msra.mxu1 %v81_v3  ;;  %v76_v8 = vld [vmem:[%s410_s4 + $0x8] sm:$0xff]  ;;  %v75_v9 = vld [vmem:[%s410_s4] sm:$0xff]  ;;  %v119_v10 = vld [vmem:[%s412_s6 + $0x38] sm:$0xff]  ;;  %215 = vset.pattern.permute.xlu2 %v284_v32 }
   0x9   :  { %v118_v11 = vld [vmem:[%s412_s6 + $0x30] sm:$0xff]  ;;  %135 = vmatpush.msra.mxu2 %v119_v10  ;;  %v117_v12 = vld [vmem:[%s412_s6 + $0x28] sm:$0xff]  ;;  %v217_v13 = vld [vmem:[%s409_s3] ss:$0 sm:$0xff]  ;;  %vm180_vm4 = vcmp.eq.s32.totalorder %v161_v39, 2  ;;  %vm179_vm5 = vcmp.eq.s32.totalorder %v161_v39, 1 }
   0xa   :  { %101 = vmatpush.msra.mxu1 %v80_v4  ;;  %v116_v17 = vld [vmem:[%s412_s6 + $0x20] sm:$0xff]  ;;  %v115_v18 = vld [vmem:[%s412_s6 + $0x18] sm:$0xff]  ;;  %v114_v19 = vld [vmem:[%s412_s6 + $0x10] sm:$0xff]  ;;  %vm178_vm6 = vcmp.eq.s32.totalorder %v161_v39, 0 }
   0xb   :  { %136 = vmatpush.msra.mxu2 %v118_v11  ;;  %v113_v20 = vld [vmem:[%s412_s6 + $0x8] sm:$0xff]  ;;  %v112_v21 = vld [vmem:[%s412_s6] sm:$0xff] }
   0xc   :  { %102 = vmatpush.msra.mxu1 %v79_v5  ;;  %v218_v22 = vld [vmem:[%s411_s5] ss:$0 sm:$0xff] }
   0xd   :  { %137 = vmatpush.msra.mxu2 %v117_v12  ;;  %v219_v27 = vld [vmem:[%s413_s7] ss:$0 sm:$0xff] }
   0xe   :  { %103 = vmatpush.msra.mxu1 %v78_v6  ;;  %v162_v31 = vld [vmem:[%s407_s1] sm:$0xff]  ;;  %s285_s1 = smov [#allocation5]  }
   0xf   :  { %138 = vmatpush.msra.mxu2 %v116_v17  ;;  %s195_s7 = sshll.u32 %s285_s1, 4  ;;  %s196_s7 = int_to_ptr.vmem [resolvable:$true] %s195_s7 }
  0x10   :  { %104 = vmatpush.msra.mxu1 %v77_v7 }
  0x11   :  { %139 = vmatpush.msra.mxu2 %v115_v18 }
  0x12   :  { %105 = vmatpush.msra.mxu1 %v76_v8 }
  0x13   :  { %140 = vmatpush.msra.mxu2 %v114_v19 }
  0x14   :  { %106 = vmatpush.msra.mxu1 %v75_v9 }
  0x15   :  { %141 = vmatpush.msra.mxu2 %v113_v20 }
  0x17   :  { %142 = vmatpush.msra.mxu2 %v112_v21 }
  0x84   :  { %v71_v14 = vpop.f32.mrf.mxu0 }
  0x85   :  { %v72_v15 = vadd.f32 %v217_v13, %v71_v14 }
  0x87   :  { %220 = vtanh.f32 %v72_v15 }
  0x8d   :  { %v221_v16 = vpop.eup %220 }
  0x8e   :  { %208 = vmatmul.msk.f32.vlgmr.msra.gmra.mxu1 %vm87_vm1, %v221_v16 }
 0x10b   :  { %v108_v23 = vpop.f32.mrf.mxu1 }
 0x10c   :  { %v109_v24 = vadd.f32 %v218_v22, %v108_v23 }
 0x10e   :  { %222 = vtanh.f32 %v109_v24 }
 0x114   :  { %v223_v25 = vpop.eup %222 }
 0x115   :  { %209 = vmatmul.msk.f32.vlgmr.msra.gmra.mxu2 %vm87_vm1, %v223_v25 }
 0x198   :  { %v144_v28 = vpop.f32.mrf.mxu2 }
 0x199   :  { %v145_v29 = vadd.f32 %v219_v27, %v144_v28 }
 0x19b   :  { %v148_v30 = vsel %vm147_vm2, %v145_v29, -inf }
 0x19c   :  { %149 = vmax.xlane.f32.xlu0 %v148_v30 }
 0x1b0   :  { %164 = vperm.xlu0 %214, %v162_v31  }
 0x1b8   :  { %216 = vset.pattern.permute.xlu0 %v284_v32 }
 0x20f   :  { %v150_v33 = vpop.xlane.xlu0 %149 }
 0x210   :  { %v151_v34 = vsub.f32 %v145_v29, %v150_v33 }
 0x212   :  { %v152_v35 = vmul.f32 1.442695, %v151_v34 }
 0x214   :  { %224 = vpow2.f32 %v152_v35 }
 0x21a   :  { %v225_v36 = vpop.eup %224 }
 0x21b   :  { %v154_v37 = vsel %vm147_vm2, %v225_v36, 0.0  ;;  %v172_v40 = vmul.f32 %v225_v36, %v151_v34 }
 0x21c   :  { %155 = vadd.xlane.f32.xlu1 %v154_v37 }
 0x21d   :  { %v173_v42 = vsel %vm147_vm2, %v172_v40, 0.0 }
 0x222   :  { %v165_v41 = vpop.permute.xlu0 %164 }
 0x223   :  { %vm166_vm3 = vcmp.eq.s32.totalorder %v161_v39, %v165_v41 }
 0x224   :  { %174 = vadd.xlane.f32.xlu1 %v173_v42  ;;  %v167_v43 = vsel %vm166_vm3, %v151_v34, 0.0 }
 0x225   :  { %v168_v44 = vsel %vm147_vm2, %v167_v43, 0.0 }
 0x226   :  { %169 = vadd.xlane.f32.xlu2 %v168_v44 }
 0x23e   :  { %184 = vperm.xlu2 %215, %v145_v29  }
 0x28f   :  { %v156_v45 = vpop.xlane.xlu1 %155 }
 0x290   :  { %226 = vlog2.f32 %v156_v45 }
 0x291   :  { %228 = vrcp.f32 %v156_v45 }
 0x296   :  { %v227_v46 = vpop.eup %226 }
 0x297   :  { %v229_v47 = vpop.eup %228  ;;  %v175_v48 = vpop.xlane.xlu1 %174  ;;  %v158_v49 = vmul.f32 0.6931472, %v227_v46 }
 0x298   :  { %v176_v50 = vmul.f32 %v229_v47, %v175_v48 }
 0x299   :  { %v170_v51 = vpop.xlane.xlu2 %169 }
 0x29a   :  { %v177_v52 = vsub.f32 %v158_v49, %v176_v50  ;;  %v171_v53 = vsub.f32 %v170_v51, %v158_v49 }
 0x29c   :  { %v181_v54 = vsel %vm180_vm4, %v177_v52, 0.0 }
 0x2a1   :  { %v185_v55 = vpop.permute.xlu2 %184 }
 0x2a2   :  { %v187_v56 = vsel %vm179_vm5, %v185_v55, %v181_v54 }
 0x2a3   :  { %v188_v57 = vsel %vm178_vm6, %v171_v53, %v187_v56 }
 0x2a4   :  { %189 = vst [vmem:[#allocation5] sm:$0xff] %v188_v57 }
 0x2a5   :  { %200 = dma.vmem_to_hbm [thread:$0]  %s196_s7, 128, %s198_s24, [#allocation4]  }
 0x2a6   :  { %280 = dma.done.wait [#allocation4], 128  }
 0x2a7   :  { %281 = vsyncadd [#allocation4], 4294967168 }
 0x2a8   :  { %205 = vsyncpa [#allocation3], 1 }
 0x2a9   :  { %206 = vsyncpa [#allocation4], 1 }

</bundles_post_ra>
